<compile_context>
chip_gen: v7x
topology: tpu7x:2x2x1
jax: 0.10.0
libtpu: 0.0.40
codegen_flags: <defaults>
</compile_context>

<pallas_src>
import jax
import jax.numpy as jnp
from jax.experimental import pallas as pl
from jax.experimental.pallas import tpu as pltpu


def _round_up(x, m):
    return ((x + m - 1) // m) * m


def _cdiv(a, b):
    return (a + b - 1) // b


# ---------------------------------------------------------------------------
# Kernel: one (tm, tn) output tile, reduced over the K grid axis (axis 2).
#   x_ref: (tm, tk) bf16   activations
#   w_ref: (tk, tn) bf16   weight already in (IN, OUT) = (K, N) layout
#   b_ref: (1,  tn) f32    bias
#   o_ref: (tm, tn) f32    output block, used directly as the f32 accumulator
# ---------------------------------------------------------------------------
def fc_leakyrelu_kernel(x_ref, w_ref, b_ref, o_ref):
    k = pl.program_id(2)

    @pl.when(k == 0)
    def _():
        o_ref[...] = jnp.zeros_like(o_ref)

    # bf16 x bf16 -> f32 on the MXU; no per-tile transpose needed.
    o_ref[...] += jnp.dot(x_ref[...], w_ref[...],
                          preferred_element_type=jnp.float32)

    @pl.when(k == pl.num_programs(2) - 1)
    def _():
        y = o_ref[...] + b_ref[...]
        o_ref[...] = jnp.maximum(y, 0.2 * y)          # LeakyReLU(0.2)


def _pick_tn(out_features):
    tn = min(_round_up(out_features, 128), 512)
    # Ensure >= 2 iterations on the N "parallel" axis when OUT allows it, so
    # both v7x TensorCores get work even when the batch fits in one M tile.
    if out_features > 128:
        tn = min(tn, _round_up(_cdiv(out_features, 2), 128))
    return tn


def prepare_fc_params(weight, bias, *, tn=None, tk=None):
    """One-time (init-time) layout change of PyTorch (OUT, IN) parameters:
    transpose to (IN, OUT), zero-pad to the tile grid, cast weight to bf16."""
    out_f, in_f = weight.shape
    tn = tn or _pick_tn(out_f)
    tk = tk or min(_round_up(in_f, 128), 2048)
    out_p = _round_up(out_f, tn)
    in_p = _round_up(in_f, tk)

    w_kn = weight.T.astype(jnp.bfloat16)                      # (IN, OUT)
    if (in_p, out_p) != (in_f, out_f):
        w_kn = jnp.pad(w_kn, ((0, in_p - in_f), (0, out_p - out_f)))
    b2d = bias.astype(jnp.float32).reshape(1, out_f)
    if out_p != out_f:
        b2d = jnp.pad(b2d, ((0, 0), (0, out_p - out_f)))

    return {"w_kn": w_kn, "b2d": b2d, "in_f": in_f, "out_f": out_f,
            "in_p": in_p, "out_p": out_p, "tn": tn, "tk": tk}


def fc_layer_forward(x, params, *, tm=None):
    """x: (B, IN) float. Returns LeakyReLU_{0.2}(x @ W^T + b) as float32."""
    in_f, out_f = params["in_f"], params["out_f"]
    in_p, out_p = params["in_p"], params["out_p"]
    tn, tk = params["tn"], params["tk"]
    w_kn, b2d = params["w_kn"], params["b2d"]

    batch, in_x = x.shape
    assert in_x == in_f, "weight / input feature mismatch"

    tm = tm or min(_round_up(batch, 16), 512)   # bf16 sublane packing -> x16

    # Per-call work on x: zero-pad ONLY the K axis (needed for exactness) and
    # cast to bf16.  Partial M/N tiles are handled by output write clipping.
    x_p = x if in_p == in_f else jnp.pad(x, ((0, 0), (0, in_p - in_f)))
    x_p = x_p.astype(jnp.bfloat16)

    grid = (_cdiv(batch, tm), out_p // tn, in_p // tk)

    # Double-buffered working set -> scoped VMEM limit with headroom, capped
    # well under v7x's 64 MiB per-core VMEM.
    work = (2 * tm * tk * 2) + (2 * tk * tn * 2) + (2 * tm * tn * 4) + (2 * tn * 4)
    vmem_limit = int(min(48 * 1024 * 1024, max(32 * 1024 * 1024, 2 * work)))

    out = pl.pallas_call(
        fc_leakyrelu_kernel,
        out_shape=jax.ShapeDtypeStruct((batch, out_p), jnp.float32),
        grid_spec=pltpu.PrefetchScalarGridSpec(
            num_scalar_prefetch=0,
            grid=grid,
            in_specs=[
                pl.BlockSpec((tm, tk), lambda i, j, k: (i, k)),   # x tile
                pl.BlockSpec((tk, tn), lambda i, j, k: (k, j)),   # w tile (K, N)
                pl.BlockSpec((1, tn), lambda i, j, k: (0, j)),    # bias tile
            ],
            out_specs=pl.BlockSpec((tm, tn), lambda i, j, k: (i, j)),
        ),
        compiler_params=pltpu.CompilerParams(
            dimension_semantics=("parallel", "parallel", "arbitrary"),
            vmem_limit_bytes=vmem_limit,
        ),
    )(x_p, w_kn, b2d)

    return out if out_p == out_f else out[:, :out_f]


# ----------------------------- references ----------------------------------
def reference_f32(x, weight, bias):
    y = x @ weight.T + bias
    return jnp.maximum(y, 0.2 * y)


def reference_bf16(x, weight, bias):
    # Same precision recipe as the kernel: bf16 operands, f32 accumulation.
    y = jnp.dot(x.astype(jnp.bfloat16), weight.T.astype(jnp.bfloat16),
                preferred_element_type=jnp.float32) + bias.astype(jnp.float32)
    return jnp.maximum(y, 0.2 * y)


if __name__ == "__main__":
    key = jax.random.PRNGKey(0)

    def make_case(k, batch, in_f, out_f):
        kx, kw, kb = jax.random.split(k, 3)
        x = jax.random.normal(kx, (batch, in_f), dtype=jnp.float32)
        bound = 1.0 / float(in_f) ** 0.5
        w = jax.random.uniform(kw, (out_f, in_f), jnp.float32, -bound, bound)
        b = jax.random.uniform(kb, (out_f,), jnp.float32, -bound, bound)
        return x, w, b

    k1, k2, k3 = jax.random.split(key, 3)

    # Case 1: shapes matching Fc_layer(input_f=32, output_f=64), batch=8.
    x1, w1, b1 = make_case(k1, batch=8, in_f=32, out_f=64)
    p1 = prepare_fc_params(w1, b1)
    o1 = jax.block_until_ready(fc_layer_forward(x1, p1))
    assert o1.shape == (8, 64)
    assert jnp.allclose(o1, reference_bf16(x1, w1, b1), atol=1e-4, rtol=1e-3)
    assert jnp.allclose(o1, reference_f32(x1, w1, b1), atol=5e-2, rtol=5e-2)

    # Case 2: non-aligned sizes exercise K zero-padding + M/N write clipping.
    x2, w2, b2 = make_case(k2, batch=10, in_f=48, out_f=96)
    p2 = prepare_fc_params(w2, b2)
    o2 = jax.block_until_ready(fc_layer_forward(x2, p2))
    assert o2.shape == (10, 96)
    assert jnp.allclose(o2, reference_bf16(x2, w2, b2), atol=1e-4, rtol=1e-3)
    assert jnp.allclose(o2, reference_f32(x2, w2, b2), atol=5e-2, rtol=5e-2)

    # Case 3: small tk override -> multiple K grid steps + 2 N blocks, to
    # exercise the accumulator init/finalize path and the split-N grid.
    x3, w3, b3 = make_case(k3, batch=24, in_f=384, out_f=320)
    p3 = prepare_fc_params(w3, b3, tk=128)
    o3 = jax.block_until_ready(fc_layer_forward(x3, p3))
    assert o3.shape == (24, 320)
    assert jnp.allclose(o3, reference_bf16(x3, w3, b3), atol=1e-3, rtol=1e-3)
    assert jnp.allclose(o3, reference_f32(x3, w3, b3), atol=5e-2, rtol=5e-2)

    print("KERNEL_OK")
</pallas_src>

<mosaic_0001>
module attributes {stable_mosaic.version = 11 : i64} {
  func.func @fc_leakyrelu_kernel(%arg0: i32, %arg1: i32, %arg2: i32, %arg3: memref<16x128xbf16, #tpu.memory_space<vmem>>, %arg4: memref<128x128xbf16, #tpu.memory_space<vmem>>, %arg5: memref<1x128xf32, #tpu.memory_space<vmem>>, %arg6: memref<16x128xf32, #tpu.memory_space<vmem>>) attributes {dimension_semantics = [#tpu.dimension_semantics<parallel>, #tpu.dimension_semantics<parallel>, #tpu.dimension_semantics<arbitrary>], iteration_bounds = array<i64: 1, 1, 1>, scalar_prefetch = 0 : i64, scratch_operands = 0 : i64, tpu.core_type = #tpu.core_type<tc>, window_params = [{transform_indices = @transform_0, window_bounds = array<i64: 16, 128>}, {transform_indices = @transform_1, window_bounds = array<i64: 128, 128>}, {transform_indices = @transform_2, window_bounds = array<i64: 1, 128>}, {transform_indices = @transform_3, window_bounds = array<i64: 16, 128>}]} {
    %c0_i32 = arith.constant 0 : i32
    %0 = arith.cmpi eq, %arg2, %c0_i32 : i32
    %1 = arith.extui %0 : i1 to i32
    %c0_i32_0 = arith.constant 0 : i32
    %2 = arith.cmpi ne, %1, %c0_i32_0 : i32
    scf.if %2 {
      %cst_10 = arith.constant 0.000000e+00 : f32
      %12 = vector.broadcast %cst_10 : f32 to vector<16x128xf32>
      %c0_11 = arith.constant 0 : index
      %c0_12 = arith.constant 0 : index
      %13 = vector.load %arg6[%c0_11, %c0_12] : memref<16x128xf32, #tpu.memory_space<vmem>>, vector<16x128xf32>
      tpu.vector_store %arg6[%c0_11, %c0_12], %12 {strides = array<i32>} : memref<16x128xf32, #tpu.memory_space<vmem>>, vector<16x128xf32>,
    } else {
    }
    %c0 = arith.constant 0 : index
    %c0_1 = arith.constant 0 : index
    %3 = vector.load %arg6[%c0, %c0_1] : memref<16x128xf32, #tpu.memory_space<vmem>>, vector<16x128xf32>
    %c0_2 = arith.constant 0 : index
    %c0_3 = arith.constant 0 : index
    %4 = vector.load %arg3[%c0_2, %c0_3] : memref<16x128xbf16, #tpu.memory_space<vmem>>, vector<16x128xbf16>
    %c0_4 = arith.constant 0 : index
    %c0_5 = arith.constant 0 : index
    %5 = vector.load %arg4[%c0_4, %c0_5] : memref<128x128xbf16, #tpu.memory_space<vmem>>, vector<128x128xbf16>
    %cst = arith.constant dense<0.000000e+00> : vector<16x128xf32>
    %6 = tpu.matmul %4, %5, %cst {dimension_numbers = #tpu.dot_dimension_numbers<[1], [0], [0], [1], [0, 0, 1, 1], [], []>} : vector<16x128xbf16>, vector<128x128xbf16>, vector<16x128xf32> -> vector<16x128xf32>
    %7 = arith.addf %3, %6 : vector<16x128xf32>
    %c0_6 = arith.constant 0 : index
    %c0_7 = arith.constant 0 : index
    %8 = vector.load %arg6[%c0_6, %c0_7] : memref<16x128xf32, #tpu.memory_space<vmem>>, vector<16x128xf32>
    tpu.vector_store %arg6[%c0_6, %c0_7], %7 {strides = array<i32>} : memref<16x128xf32, #tpu.memory_space<vmem>>, vector<16x128xf32>,
    %c0_i32_8 = arith.constant 0 : i32
    %9 = arith.cmpi eq, %arg2, %c0_i32_8 : i32
    %10 = arith.extui %9 : i1 to i32
    %c0_i32_9 = arith.constant 0 : i32
    %11 = arith.cmpi ne, %10, %c0_i32_9 : i32
    scf.if %11 {
      %c0_10 = arith.constant 0 : index
      %c0_11 = arith.constant 0 : index
      %12 = vector.load %arg6[%c0_10, %c0_11] : memref<16x128xf32, #tpu.memory_space<vmem>>, vector<16x128xf32>
      %c0_12 = arith.constant 0 : index
      %c0_13 = arith.constant 0 : index
      %13 = vector.load %arg5[%c0_12, %c0_13] : memref<1x128xf32, #tpu.memory_space<vmem>>, vector<1x128xf32>
      %14 = vector.broadcast %13 : vector<1x128xf32> to vector<16x128xf32>
      %15 = arith.addf %12, %14 : vector<16x128xf32>
      %cst_14 = arith.constant 2.000000e-01 : f32
      %16 = vector.broadcast %cst_14 : f32 to vector<16x128xf32>
      %17 = arith.mulf %16, %15 : vector<16x128xf32>
      %18 = arith.maximumf %15, %17 : vector<16x128xf32>
      %c0_15 = arith.constant 0 : index
      %c0_16 = arith.constant 0 : index
      %19 = vector.load %arg6[%c0_15, %c0_16] : memref<16x128xf32, #tpu.memory_space<vmem>>, vector<16x128xf32>
      tpu.vector_store %arg6[%c0_15, %c0_16], %18 {strides = array<i32>} : memref<16x128xf32, #tpu.memory_space<vmem>>, vector<16x128xf32>,
    } else {
    }
    return
  }
  func.func @transform_0(%arg0: i32, %arg1: i32, %arg2: i32) -> (i32, i32) {
    %c0_i32 = arith.constant 0 : i32
    return %arg0, %arg2 : i32, i32
  }
  func.func @transform_1(%arg0: i32, %arg1: i32, %arg2: i32) -> (i32, i32) {
    %c0_i32 = arith.constant 0 : i32
    return %arg2, %arg1 : i32, i32
  }
  func.func @transform_2(%arg0: i32, %arg1: i32, %arg2: i32) -> (i32, i32) {
    %c0_i32 = arith.constant 0 : i32
    %c0_i32_0 = arith.constant 0 : i32
    return %c0_i32, %arg1 : i32, i32
  }
  func.func @transform_3(%arg0: i32, %arg1: i32, %arg2: i32) -> (i32, i32) {
    %c0_i32 = arith.constant 0 : i32
    return %arg0, %arg1 : i32, i32
  }
}

</mosaic_0001>

<bundles_post_ra>
// kernel: tpu_custom_call.1
= control target key start
LH: loop header
LB: loop body
LE: loop exit
PB: predicated region body
PF: predicated region fallthrough
CT: control target
= control target key end

     0   :  { %8 = vsyncpa [#allocation3], 0  ;;  %s404_s0 = inlined_call_operand.hbm [shape: bf16[8,128], index: 0, kind: input, shape index: {}]   ;;  %s405_s1 = inlined_call_operand.hbm [shape: bf16[128,128], index: 1, kind: input, shape index: {}]   ;;  %s406_s2 = inlined_call_operand.vmem [shape: f32[1,128], index: 2, kind: input, shape index: {}]   ;;  %s407_s3 = inlined_call_operand.hbm [shape: f32[8,128], index: 3, kind: output, shape index: {}]  }
   0x1   :  { %9 = vsyncpa [#allocation6], 0 }
   0x2   :  { %10 = vsyncpa [#allocation4], 0 }
   0x3   :  { %15 = vsyncadd [#allocation3], 64  ;;  %s336_s12 = smov [#allocation2]   ;;  %s264_s16 = scalar_lea.hbm %s404_s0, 64 }
   0x4   :  { %s16_s13 = sshll.u32 %s336_s12, 4  ;;  %p265_p0 = scmp.ne.s32.totalorder %s404_s0, %s264_s16  ;;  %s17_s13 = int_to_ptr.vmem [resolvable:$true] %s16_s13 }
   0x5   :  { %p268_p1 = scmp.lt.u32.totalorder %s264_s16, %s404_s0 }
   0x7   :  { %p270_p2 = pnand %p268_p1, %p265_p0 }
   0x9   :  { %273 = shalt.err (!%p270_p2)
}
   0xa   :  { %s274_s21 = scalar_lea.vmem %s17_s13, 64  ;;  %s278_s22 = scalar_lea.vmem %s17_s13, 128 }
   0xb   :  { %p275_p3 = scmp.ne.s32.totalorder %s17_s13, %s274_s21  ;;  %p279_p4 = scmp.lt.s32.totalorder %s17_s13, %s17_s13 }
   0xc   :  { %p280_p5 = scmp.lt.s32.totalorder %s278_s22, %s274_s21 }
   0xe   :  { %p281_p6 = por %p280_p5, %p279_p4 }
  0x10   :  { %p282_p7 = pnand %p281_p6, %p275_p3 }
  0x12   :  { %285 = shalt.err (!%p282_p7)
}
  0x13   :  { %s337_s23 = smov 64   ;;  %s338_s24 = smov 4  }
  0x14   :  { %22 = dma.hbm_to_vmem [thread:$0]  %s404_s0, 64, %s17_s13, [#allocation3], %s337_s23, %s337_s23, %s338_s24  }
  0x15   :  { %s339_s27 = smov [#allocation5]   ;;  %s286_s4 = scalar_lea.hbm %s405_s1, 1024 }
  0x16   :  { %s28_s28 = sshll.u32 %s339_s27, 4  ;;  %p287_p8 = scmp.ne.s32.totalorder %s405_s1, %s286_s4  ;;  %s29_s28 = int_to_ptr.vmem [resolvable:$true] %s28_s28 }
  0x17   :  { %p290_p9 = scmp.lt.u32.totalorder %s286_s4, %s405_s1 }
  0x19   :  { %p292_p10 = pnand %p290_p9, %p287_p8 }
  0x1b   :  { %295 = shalt.err (!%p292_p10)
}
  0x1c   :  { %s296_s9 = scalar_lea.vmem %s29_s28, 1024  ;;  %p301_p12 = scmp.lt.s32.totalorder %s29_s28, %s29_s28 }
  0x1d   :  { %p297_p11 = scmp.ne.s32.totalorder %s29_s28, %s296_s9  ;;  %p302_p13 = scmp.lt.s32.totalorder %s296_s9, %s296_s9 }
  0x1f   :  { %p303_p0 = por %p302_p13, %p301_p12 }
  0x21   :  { %p304_p1 = pnand %p303_p0, %p297_p11 }
  0x23   :  { %307 = shalt.err (!%p304_p1)
}
  0x24   :  { %34 = dma.hbm_to_vmem [thread:$0]  %s405_s1, 1024, %s29_s28, [#allocation6], %s337_s23, %s337_s23, %s338_s24  }
  0x25   :  { %330 = dma.done.wait [#allocation3], 128  }
  0x26   :  { %331 = vsyncadd [#allocation3], 4294967168 }
  0x27   :  { %332 = dma.done.wait [#allocation6], 1024  }
  0x28   :  { %333 = vsyncadd [#allocation6], 4294966272  ;;  %v340_v0 = vmov 0.0   ;;  %vm341_vm0 = vmmov 0   ;;  %v255_v1 = vld [vmem:[#allocation5] sm:$0xff]   ;;  %v256_v2 = vld [vmem:[#allocation5 + $0x8] sm:$0xff]  }
  0x29   :  { %226 = vmatprep.subr.bf16.mxu0 %v340_v0  ;;  %242 = vmatprep.mubr.msk.bf16.mxu0 %vm341_vm0, %v340_v0  ;;  %v257_v3 = vld [vmem:[#allocation5 + $0x10] sm:$0xff]   ;;  %v258_v4 = vld [vmem:[#allocation5 + $0x18] sm:$0xff]   ;;  %v259_v5 = vld [vmem:[#allocation5 + $0x20] sm:$0xff]  }
  0x2a   :  { %227 = vmatpush3.bf16.msra.mxu0 %v255_v1  ;;  %v260_v6 = vld [vmem:[#allocation5 + $0x28] sm:$0xff]   ;;  %v261_v7 = vld [vmem:[#allocation5 + $0x30] sm:$0xff]   ;;  %v262_v8 = vld [vmem:[#allocation5 + $0x38] sm:$0xff]  }
  0x2b   :  { %228 = vmatprep.subr.bf16.mxu0 %v340_v0  ;;  %v263_v9 = vld [vmem:[#allocation2] sm:$0xff]  }
  0x2c   :  { %v216_v11 = vld [vmem:[%s406_s2] ss:$0 sm:$0xff] }
  0x2e   :  { %229 = vmatpush3.bf16.msra.mxu0 %v256_v2 }
  0x2f   :  { %230 = vmatprep.subr.bf16.mxu0 %v340_v0 }
  0x32   :  { %231 = vmatpush3.bf16.msra.mxu0 %v257_v3 }
  0x33   :  { %232 = vmatprep.subr.bf16.mxu0 %v340_v0 }
  0x36   :  { %233 = vmatpush3.bf16.msra.mxu0 %v258_v4 }
  0x37   :  { %234 = vmatprep.subr.bf16.mxu0 %v340_v0 }
  0x3a   :  { %235 = vmatpush3.bf16.msra.mxu0 %v259_v5 }
  0x3b   :  { %236 = vmatprep.subr.bf16.mxu0 %v340_v0 }
  0x3e   :  { %237 = vmatpush3.bf16.msra.mxu0 %v260_v6 }
  0x3f   :  { %238 = vmatprep.subr.bf16.mxu0 %v340_v0 }
  0x42   :  { %239 = vmatpush3.bf16.msra.mxu0 %v261_v7 }
  0x43   :  { %240 = vmatprep.subr.bf16.mxu0 %v340_v0 }
  0x46   :  { %241 = vmatpush3.bf16.msra.mxu0 %v262_v8 }
  0x49   :  { %243 = vmatmul.mubr.bf16.vlgmr.msra.gmra.mrb[0].mxu0 %v263_v9 }
 0x11c   :  { %v158_v10 = vpop.f32.mrb[0].mxu0 }
 0x11d   :  { %v244_v12 = vpop.f32.mrb[1].mxu0  ;;  %v181_v14 = vadd.f32 %v216_v11, %v158_v10 }
 0x11e   :  { %v161_v13 = vpop.f32.mrb[2].mxu0 }
 0x11f   :  { %v245_v15 = vpop.f32.mrb[3].mxu0  ;;  %v183_v16 = vmul.f32 0.2, %v181_v14  ;;  %v182_v17 = vadd.f32 %v216_v11, %v161_v13 }
 0x121   :  { %v185_v18 = vmax.f32 %v181_v14, %v183_v16  ;;  %v184_v19 = vmul.f32 0.2, %v182_v17 }
 0x123   :  { %187 = vst [vmem:[#allocation7] sm:$0xff] %v185_v18  ;;  %v186_v20 = vmax.f32 %v182_v17, %v184_v19 }
 0x125   :  { %188 = vst [vmem:[#allocation7 + $0x8] sm:$0xff] %v186_v20 }
 0x126   :  { %193 = vsyncadd [#allocation4], 128  ;;  %s342_s12 = smov [#allocation7]  }
 0x127   :  { %s194_s13 = sshll.u32 %s342_s12, 4  ;;  %s195_s13 = int_to_ptr.vmem [resolvable:$true] %s194_s13 }
 0x128   :  { %s308_s14 = scalar_lea.vmem %s195_s13, 128  ;;  %s312_s15 = scalar_lea.vmem %s195_s13, 256 }
 0x129   :  { %p309_p2 = scmp.ne.s32.totalorder %s195_s13, %s308_s14  ;;  %p313_p3 = scmp.lt.s32.totalorder %s195_s13, %s195_s13 }
 0x12a   :  { %p314_p4 = scmp.lt.s32.totalorder %s312_s15, %s308_s14 }
 0x12c   :  { %p315_p5 = por %p314_p4, %p313_p3 }
 0x12e   :  { %p316_p6 = pnand %p315_p5, %p309_p2 }
 0x130   :  { %319 = shalt.err (!%p316_p6)
}
 0x131   :  { %s320_s17 = scalar_lea.hbm %s407_s3, 128 }
 0x132   :  { %p321_p7 = scmp.ne.s32.totalorder %s407_s3, %s320_s17  ;;  %p324_p8 = scmp.lt.u32.totalorder %s320_s17, %s407_s3 }
 0x134   :  { %p326_p9 = pnand %p324_p8, %p321_p7 }
 0x136   :  { %329 = shalt.err (!%p326_p9)
}
 0x137   :  { %s343_s22 = smov 128   ;;  %s344_s23 = smov 8  }
 0x138   :  { %200 = dma.vmem_to_hbm [thread:$0]  %s195_s13, 128, %s407_s3, [#allocation4], %s343_s22, %s343_s22, %s344_s23  }
 0x139   :  { %334 = dma.done.wait [#allocation4], 256  }
 0x13a   :  { %335 = vsyncadd [#allocation4], 4294967040 }
 0x13b   :  { %204 = vsyncpa [#allocation3], 1 }
 0x13c   :  { %205 = vsyncpa [#allocation6], 1 }
 0x13d   :  { %206 = vsyncpa [#allocation4], 1 }

</bundles_post_ra>
